<compile_context>
chip_gen: v6e
topology: v6e:2x2x1
jax: 0.10.0
libtpu: 0.0.40
codegen_flags: <defaults>
</compile_context>

<pallas_src>
import functools
import math

import jax
import jax.numpy as jnp
from jax.experimental import pallas as pl
from jax.experimental.pallas import tpu as pltpu


def _bloss_kernel(x_ref, t_ref, o_ref, *, batch_rows, c1, c2, scale, ratio):
    """x_ref: VMEM [N, C]  = mask_norm_c (full array; only rows [0:B) are used)
       t_ref: VMEM [T, C]  = norm_c_t
       o_ref: SMEM (1,) f32 = bloss (scalar)
       c1 = p*sqrt(den_target); c2 = p - p*sqrt(den_target) - 1
       scale = gamma / C;       ratio = T / B
    """
    # Row (sublane) sums; cast to f32 in-kernel so bf16 inputs never need a
    # wrapper-side f32 copy in HBM (and compute stays f32 on v5e).
    sum_x = jnp.sum(x_ref[:batch_rows, :].astype(jnp.float32),
                    axis=0, keepdims=True)                      # [1, C]
    sum_t = jnp.sum(t_ref[...].astype(jnp.float32),
                    axis=0, keepdims=True)                      # [1, C]

    # den_c = (sum_x/B) / (sum_t/T) = (sum_x * T/B) / sum_t
    # Full-precision divide: matches reference x/0 -> inf and 0/0 -> nan
    # semantics and the 1e-5 tolerance (approx reciprocal would not).
    den_c = (sum_x * ratio) / sum_t                             # [1, C]

    lo = jnp.maximum(c1 - den_c, 0.0)          # relu(p*den_tar - den_c)
    up = jnp.maximum(den_c + c2, 0.0)          # relu(den_c - 1 + p - p*den_tar)
    s = lo * lo + up * up                      # fused square-sum

    # Single cross-lane (XLU) reduction, then one scalar multiply; the mean
    # over C is folded into `scale`. Scalar store straight to SMEM.
    o_ref[0] = scale * jnp.sum(s)


def blance_loss_forward(mask_norm_c, norm_c_t, batch_size, den_target, gamma, p):
    """JAX/Pallas equivalent of blance_loss.forward. Returns a scalar f32.

    batch_size / den_target / gamma / p must be static Python values
    (same requirement as the PyTorch reference, which uses math.sqrt and a
    Python slice).
    """
    B = int(batch_size)
    N, C = int(mask_norm_c.shape[0]), int(mask_norm_c.shape[1])
    T = int(norm_c_t.shape[0])
    assert norm_c_t.shape[1] == C

    den_tar = math.sqrt(den_target)
    kernel = functools.partial(
        _bloss_kernel,
        batch_rows=B,
        c1=float(p * den_tar),
        c2=float(p - p * den_tar - 1.0),
        scale=float(gamma / C),
        ratio=float(T / B),
    )

    bytes_in = (mask_norm_c.size * mask_norm_c.dtype.itemsize
                + norm_c_t.size * norm_c_t.dtype.itemsize)
    cost = pl.CostEstimate(
        flops=4 * (N + T) * C,
        transcendentals=0,
        bytes_accessed=bytes_in + 4,
    )

    out = pl.pallas_call(
        kernel,
        out_shape=jax.ShapeDtypeStruct((1,), jnp.float32),
        in_specs=[
            pl.BlockSpec((N, C), lambda: (0, 0)),   # mask_norm_c, full array -> VMEM
            pl.BlockSpec((T, C), lambda: (0, 0)),   # norm_c_t,    full array -> VMEM
        ],
        out_specs=pl.BlockSpec(memory_space=pltpu.MemorySpace.SMEM),
        cost_estimate=cost,
    )(mask_norm_c, norm_c_t)
    return out[0]


def _reference(mask_norm_c, norm_c_t, batch_size, den_target, gamma, p):
    norm_c_t_m = norm_c_t.mean(0)
    den_c = mask_norm_c[:batch_size, :].mean(0) / norm_c_t_m
    den_tar = math.sqrt(den_target)
    bloss_l = (jnp.maximum(p * den_tar - den_c, 0.0) ** 2).mean()
    bloss_u = (jnp.maximum(den_c - 1.0 + p - p * den_tar, 0.0) ** 2).mean()
    return gamma * (bloss_l + bloss_u)


if __name__ == "__main__":
    key = jax.random.PRNGKey(0)
    k1, k2 = jax.random.split(key)

    N, C, T = 6, 128, 4          # mask_norm_c rows, channels, norm_c_t rows
    batch_size = 4
    den_target = 0.5
    gamma = 1.0
    p = 0.3

    # mask_norm_c in [0, 1] (per-channel "sparsity"), norm_c_t strictly positive
    mask_norm_c = jax.random.uniform(k1, (N, C), dtype=jnp.float32)
    norm_c_t = 0.5 + jax.random.uniform(k2, (T, C), dtype=jnp.float32)

    bloss = blance_loss_forward(
        mask_norm_c, norm_c_t, batch_size, den_target, gamma, p
    )
    bloss = jax.block_until_ready(bloss)

    ref = _reference(mask_norm_c, norm_c_t, batch_size, den_target, gamma, p)
    assert jnp.allclose(bloss, ref, atol=1e-5, rtol=1e-5), (bloss, ref)

    print("KERNEL_OK")
</pallas_src>

<mosaic_0001>
module attributes {stable_mosaic.version = 11 : i64} {
  func.func @_bloss_kernel(%arg0: memref<6x128xf32, #tpu.memory_space<vmem>>, %arg1: memref<4x128xf32, #tpu.memory_space<vmem>>, %arg2: memref<1xf32, #tpu.memory_space<smem>>) attributes {dimension_semantics = [], scalar_prefetch = 0 : i64, scratch_operands = 0 : i64, tpu.core_type = #tpu.core_type<tc>} {
    %c0 = arith.constant 0 : index
    %c0_0 = arith.constant 0 : index
    %0 = vector.load %arg0[%c0, %c0_0] : memref<6x128xf32, #tpu.memory_space<vmem>>, vector<4x128xf32>
    %cst = arith.constant dense<0.000000e+00> : vector<128xf32>
    %1 = vector.multi_reduction <add>, %0, %cst [0] : vector<4x128xf32> to vector<128xf32>
    %2 = vector.shape_cast %1 : vector<128xf32> to vector<1x128xf32>
    %c0_1 = arith.constant 0 : index
    %c0_2 = arith.constant 0 : index
    %3 = vector.load %arg1[%c0_1, %c0_2] : memref<4x128xf32, #tpu.memory_space<vmem>>, vector<4x128xf32>
    %cst_3 = arith.constant dense<0.000000e+00> : vector<128xf32>
    %4 = vector.multi_reduction <add>, %3, %cst_3 [0] : vector<4x128xf32> to vector<128xf32>
    %5 = vector.shape_cast %4 : vector<128xf32> to vector<1x128xf32>
    %cst_4 = arith.constant 1.000000e+00 : f32
    %6 = vector.broadcast %cst_4 : f32 to vector<1x128xf32>
    %7 = arith.mulf %2, %6 : vector<1x128xf32>
    %8 = arith.divf %7, %5 : vector<1x128xf32>
    %cst_5 = arith.constant 0.212132037 : f32
    %9 = vector.broadcast %cst_5 : f32 to vector<1x128xf32>
    %10 = arith.subf %9, %8 : vector<1x128xf32>
    %cst_6 = arith.constant 0.000000e+00 : f32
    %11 = vector.broadcast %cst_6 : f32 to vector<1x128xf32>
    %12 = arith.maximumf %10, %11 : vector<1x128xf32>
    %cst_7 = arith.constant -9.121320e-01 : f32
    %13 = vector.broadcast %cst_7 : f32 to vector<1x128xf32>
    %14 = arith.addf %8, %13 : vector<1x128xf32>
    %cst_8 = arith.constant 0.000000e+00 : f32
    %15 = vector.broadcast %cst_8 : f32 to vector<1x128xf32>
    %16 = arith.maximumf %14, %15 : vector<1x128xf32>
    %17 = arith.mulf %12, %12 : vector<1x128xf32>
    %18 = arith.mulf %16, %16 : vector<1x128xf32>
    %19 = arith.addf %17, %18 : vector<1x128xf32>
    %20 = vector.shape_cast %19 : vector<1x128xf32> to vector<1x1x128xf32>
    %cst_9 = arith.constant dense<0.000000e+00> : vector<1xf32>
    %21 = vector.multi_reduction <add>, %20, %cst_9 [1, 2] : vector<1x1x128xf32> to vector<1xf32>
    %22 = vector.shape_cast %21 : vector<1xf32> to vector<1x1x1xf32>
    %23 = vector.extract %22[0, 0, 0] : f32 from vector<1x1x1xf32>
    %cst_10 = arith.constant 7.812500e-03 : f32
    %24 = arith.mulf %cst_10, %23 : f32
    %c0_11 = arith.constant 0 : index
    %25 = memref.load %arg2[%c0_11] : memref<1xf32, #tpu.memory_space<smem>>
    memref.store %24, %arg2[%c0_11] : memref<1xf32, #tpu.memory_space<smem>>
    return
  }
}

</mosaic_0001>

<bundles_post_ra>
// kernel: tpu_custom_call.1
= control target key start
LH: loop header
LB: loop body
LE: loop exit
PB: predicated region body
PF: predicated region fallthrough
CT: control target
= control target key end

     0   :  { %7 = vsyncpa [#allocation3], 0  ;;  %s179_s0 = inlined_call_operand.hbm [shape: f32[6,128], index: 0, kind: input, shape index: {}]   ;;  %s180_s1 = inlined_call_operand.hbm [shape: f32[4,128], index: 1, kind: input, shape index: {}]   ;;  %s181_s2 = inlined_call_operand.hbm [shape: f32[1], index: 2, kind: output, shape index: {}]  }
   0x1   :  { %8 = vsyncpa [#allocation6], 0 }
   0x2   :  { %9 = vsyncpa [#allocation4], 0  ;;  %s152_s9 = smov [#allocation2]   ;;  %s153_s11 = smov [#allocation5]  }
   0x3   :  { %s16_s10 = sshll.u32 %s152_s9, 4  ;;  %s26_s12 = sshll.u32 %s153_s11, 4  ;;  %s17_s10 = int_to_ptr.vmem [resolvable:$true] %s16_s10  ;;  %s27_s12 = int_to_ptr.vmem [resolvable:$true] %s26_s12 }
   0x4   :  { %s106_s13 = scalar_lea.vmem %s17_s10, 128  ;;  %p111_p1 = scmp.lt.s32.totalorder %s17_s10, %s17_s10 }
   0x5   :  { %p107_p0 = scmp.ne.s32.totalorder %s17_s10, %s106_s13  ;;  %p112_p2 = scmp.lt.s32.totalorder %s106_s13, %s106_s13 }
   0x7   :  { %p113_p3 = por %p112_p2, %p111_p1 }
   0x9   :  { %p114_p4 = pnand %p113_p3, %p107_p0 }
   0xb   :  { %117 = shalt.err (!%p114_p4)
}
   0xc   :  { %19 = dma.hbm_to_vmem [thread:$0]  %s179_s0, 128, %s17_s10, [#allocation3]  }
   0xd   :  { %s126_s16 = scalar_lea.vmem %s27_s12, 64  ;;  %p131_p6 = scmp.lt.s32.totalorder %s27_s12, %s27_s12 }
   0xe   :  { %p127_p5 = scmp.ne.s32.totalorder %s27_s12, %s126_s16  ;;  %p132_p7 = scmp.lt.s32.totalorder %s126_s16, %s126_s16 }
  0x10   :  { %p133_p8 = por %p132_p7, %p131_p6 }
  0x12   :  { %p134_p9 = pnand %p133_p8, %p127_p5 }
  0x14   :  { %137 = shalt.err (!%p134_p9)
}
  0x15   :  { %29 = dma.hbm_to_vmem [thread:$0]  %s180_s1, 64, %s27_s12, [#allocation6]  }
  0x16   :  { %146 = dma.done.wait [#allocation3], 128  }
  0x17   :  { %147 = vsyncadd [#allocation3], 4294967168 }
  0x18   :  { %148 = dma.done.wait [#allocation6], 64  }
  0x19   :  { %149 = vsyncadd [#allocation6], 4294967232  ;;  %vm37_vm0 = vcmask 1043456   ;;  %v36_v0 = vld [vmem:[#allocation2] sm:$0xf]  ;;  %vm62_vm1 = vcmask 1040384  }
  0x1a   :  { %v45_v1 = vld [vmem:[#allocation5] sm:$0xf]  ;;  %v38_v2 = vsel %vm37_vm0, %v36_v0, 0.0  ;;  %s154_s19 = smov [#allocation7]  }
  0x1b   :  { %v46_v3 = vsel %vm37_vm0, %v45_v1, 0.0  ;;  %v39_v5 = vrot.slane %v38_v2, 4 }
  0x1c   :  { %v47_v4 = vrot.slane %v46_v3, 4 }
  0x1d   :  { %v40_v8 = vadd.f32 %v39_v5, %v38_v2 }
  0x1e   :  { %v48_v6 = vadd.f32 %v47_v4, %v46_v3 }
  0x1f   :  { %v41_v11 = vrot.slane %v40_v8, 2 }
  0x20   :  { %v49_v7 = vrot.slane %v48_v6, 2 }
  0x21   :  { %v42_v13 = vadd.f32 %v41_v11, %v40_v8 }
  0x22   :  { %v50_v9 = vadd.f32 %v49_v7, %v48_v6 }
  0x23   :  { %v43_v14 = vrot.slane %v42_v13, 1 }
  0x24   :  { %v51_v10 = vrot.slane %v50_v9, 1 }
  0x25   :  { %v44_v15 = vadd.f32 %v43_v14, %v42_v13 }
  0x26   :  { %v52_v12 = vadd.f32 %v51_v10, %v50_v9 }
  0x28   :  { %96 = vrcp.f32 %v52_v12 }
  0x35   :  { %v97_v16 = vpop.eup %96 }
  0x36   :  { %v54_v17 = vmul.f32 %v97_v16, %v44_v15 }
  0x38   :  { %v55_v18 = vsub.f32 0.21213204, %v54_v17  ;;  %v57_v19 = vadd.f32 -0.912132, %v54_v17 }
  0x3a   :  { %v56_v20 = vmax.f32 %v55_v18, 0.0  ;;  %v58_v21 = vmax.f32 %v57_v19, 0.0 }
  0x3c   :  { %v59_v22 = vmul.f32 %v56_v20, %v56_v20  ;;  %v60_v23 = vmul.f32 %v58_v21, %v58_v21 }
  0x3e   :  { %v61_v24 = vadd.f32 %v60_v23, %v59_v22 }
  0x40   :  { %v63_v25 = vsel %vm62_vm1, %v61_v24, 0.0 }
  0x41   :  { %64 = vadd.xlane.f32.xlu0 %v63_v25 }
  0xca   :  { %v65_v26 = vpop.xlane.xlu0 %64 }
  0xcb   :  { %v66_v27 = vrot.slane %v65_v26, 4 }
  0xcd   :  { %v67_v28 = vadd.f32 %v66_v27, %v65_v26 }
  0xcf   :  { %v68_v29 = vrot.slane %v67_v28, 2 }
  0xd1   :  { %v69_v30 = vadd.f32 %v68_v29, %v67_v28 }
  0xd3   :  { %v70_v31 = vrot.slane %v69_v30, 1 }
  0xd5   :  { %v71_v32 = vadd.f32 %v70_v31, %v69_v30 }
  0xd7   :  { %91 = vpush %v71_v32 }
 0x108   :  { %s92_s0 = spop %91 }
 0x109   :  { %s73_s1 = smul.f32 0.0078125, %s92_s0 }
 0x10b   :  { %75 = sst [smem:[#allocation7]] %s73_s1 }
 0x10c   :  { %83 = dma.smem_to_hbm %s154_s19, 16, %s181_s2, [#allocation4]  }
 0x10d   :  { %150 = dma.done.wait [#allocation4], 16  }
 0x10e   :  { %151 = vsyncadd [#allocation4], 4294967280 }
 0x10f   :  { %87 = sfence }
 0x110   :  { %88 = vsyncpa [#allocation3], 1 }
 0x111   :  { %89 = vsyncpa [#allocation6], 1 }
 0x112   :  { %90 = vsyncpa [#allocation4], 1 }

</bundles_post_ra>
